<compile_context>
chip_gen: v7x
topology: tpu7x:2x2x1
jax: 0.10.0
libtpu: 0.0.40
codegen_flags: <defaults>
</compile_context>

<pallas_src>
import functools

import jax
import jax.numpy as jnp
from jax.experimental import pallas as pl
from jax.experimental.pallas import tpu as pltpu


def _round_down(v, m):
    return (v // m) * m


def _round_up(v, m):
    return -(-v // m) * m


def _outconv_kernel_mxu(w_ref, b_ref, x_ref, o_ref):
    # w_ref: (C_out, C_in) VMEM, b_ref: (C_out, 1) VMEM f32
    # x_ref: (n_blk, C_in, t_hw), o_ref: (n_blk, C_out, t_hw)
    n_blk = x_ref.shape[0]
    w = w_ref[...]
    b = b_ref[...]
    for bi in range(n_blk):
        acc = jnp.dot(w, x_ref[bi], preferred_element_type=jnp.float32)
        o_ref[bi] = (acc + b).astype(o_ref.dtype)


def _outconv_kernel_vpu(w_ref, b_ref, x_ref, o_ref):
    # Degenerate channel counts: unrolled broadcast-FMA on the VPU, MXU left idle.
    # w_ref: (C_out, C_in) SMEM f32, b_ref: (C_out,) SMEM f32 (scalar reads)
    # x_ref: (n_blk, C_in, t_hw), o_ref: (n_blk, C_out, t_hw)
    n_blk, c_in, t_hw = x_ref.shape
    c_out = o_ref.shape[1]
    for bi in range(n_blk):
        xb = x_ref[bi].astype(jnp.float32)            # (C_in, t_hw)
        rows = []
        for co in range(c_out):
            acc = jnp.full((1, t_hw), b_ref[co], dtype=jnp.float32)
            for ci in range(c_in):
                acc = acc + w_ref[co, ci] * xb[ci:ci + 1, :]
            rows.append(acc)
        o_ref[bi] = jnp.concatenate(rows, axis=0).astype(o_ref.dtype)


@functools.partial(
    jax.jit, static_argnames=("target_tile_bytes", "t_hw_cap", "mxu_min_cin"))
def outconv_forward(x_nchw, weight, bias, *,
                    target_tile_bytes=2 * 1024 * 1024,
                    t_hw_cap=32768,
                    mxu_min_cin=32):
    """1x1 Conv2d forward (UNet OutConv).

    x_nchw: (N, C_in, H, W)          f32 or bf16
    weight: (C_out, C_in, 1, 1)      (PyTorch Conv2d layout)
    bias:   (C_out,)
    returns (N, C_out, H, W) in x's dtype (f32 accumulation inside).
    """
    N, C_in, H, W = x_nchw.shape
    C_out = weight.shape[0]
    HW = H * W
    x_itemsize = jnp.dtype(x_nchw.dtype).itemsize
    out_dtype = x_nchw.dtype
    out_itemsize = jnp.dtype(out_dtype).itemsize

    # ---- tiling: size one x tile to ~target_tile_bytes of HBM traffic ----
    lanes_target = _round_down(
        max(target_tile_bytes // max(1, C_in * x_itemsize), 128), 128)
    lanes_target = max(128, min(lanes_target, t_hw_cap))
    if HW > lanes_target:
        # Large plane: tile the spatial (lane) axis in multiples of 128 lanes;
        # ragged last tile handled by cdiv grid + Pallas partial-block masking.
        t_hw, n_blk = lanes_target, 1
    else:
        # Small plane: whole plane per step (full-dim block is always legal, even
        # when HW % 128 != 0); amortize step overhead by packing images per step.
        t_hw = HW
        plane_bytes = max(1, C_in * HW * x_itemsize)
        n_blk = max(1, min(N, target_tile_bytes // plane_bytes))
        while N % n_blk:            # keep exact blocking of the batch axis
            n_blk -= 1

    num_hw_tiles = pl.cdiv(HW, t_hw)
    num_n_blocks = N // n_blk

    # ---- free reshapes only (no transposes, no data padding) ----
    x3 = x_nchw.reshape(N, C_in, HW)
    w2d = weight.reshape(C_out, C_in)
    use_mxu = C_in >= mxu_min_cin

    if use_mxu:
        kernel = _outconv_kernel_mxu
        w_arg = w2d.astype(x_nchw.dtype)                 # bf16 x -> bf16 weights on the MXU
        b_arg = bias.reshape(C_out, 1).astype(jnp.float32)
        w_spec = pl.BlockSpec((C_out, C_in), lambda i, j: (0, 0))
        b_spec = pl.BlockSpec((C_out, 1), lambda i, j: (0, 0))
    else:
        kernel = _outconv_kernel_vpu
        w_arg = w2d.astype(jnp.float32)                  # scalar reads from SMEM
        b_arg = bias.astype(jnp.float32)
        w_spec = pl.BlockSpec(memory_space=pltpu.MemorySpace.SMEM)
        b_spec = pl.BlockSpec(memory_space=pltpu.MemorySpace.SMEM)

    # ---- grid: larger parallel axis first (v7x megacore balance; no-op v5e/v6e) ----
    if num_hw_tiles >= num_n_blocks:
        grid = (num_hw_tiles, num_n_blocks)
        xo_map = lambda j, b: (b, 0, j)
    else:
        grid = (num_n_blocks, num_hw_tiles)
        xo_map = lambda b, j: (b, 0, j)

    x_spec = pl.BlockSpec((n_blk, C_in, t_hw), xo_map)
    o_spec = pl.BlockSpec((n_blk, C_out, t_hw), xo_map)

    # ---- scoped-VMEM limit from the padded, double-buffered tile footprint ----
    def _padded_tile_bytes(ch, itemsize):
        sublane_pack = 8 * max(1, 4 // itemsize)         # 8 f32 / 16 bf16 rows per tile
        return n_blk * _round_up(ch, sublane_pack) * _round_up(t_hw, 128) * itemsize

    vmem_needed = 2 * (_padded_tile_bytes(C_in, x_itemsize)
                       + _padded_tile_bytes(C_out, out_itemsize)) + (1 << 20)
    vmem_limit = int(min(48 << 20, max(32 << 20, 2 * vmem_needed)))

    cost = pl.CostEstimate(
        flops=2 * N * HW * C_in * C_out,
        transcendentals=0,
        bytes_accessed=N * HW * C_in * x_itemsize
        + N * HW * C_out * out_itemsize
        + (C_out * C_in + C_out) * 4,
    )

    out3 = pl.pallas_call(
        kernel,
        out_shape=jax.ShapeDtypeStruct((N, C_out, HW), out_dtype),
        grid_spec=pltpu.PrefetchScalarGridSpec(
            num_scalar_prefetch=0,
            grid=grid,
            in_specs=[w_spec, b_spec, x_spec],
            out_specs=o_spec,
        ),
        compiler_params=pltpu.CompilerParams(
            dimension_semantics=("parallel", "parallel"),
            vmem_limit_bytes=vmem_limit,
        ),
        cost_estimate=cost,
    )(w_arg, b_arg, x3)

    return out3.reshape(N, C_out, H, W)


def _reference(x_nchw, weight, bias):
    # Pure-JAX reference (f32 einsum over channels).
    w2d = weight.reshape(weight.shape[0], weight.shape[1]).astype(jnp.float32)
    xf = x_nchw.astype(jnp.float32)
    y = jnp.einsum("nchw,oc->nohw", xf, w2d)
    return y + bias.astype(jnp.float32).reshape(1, -1, 1, 1)


if __name__ == "__main__":
    key = jax.random.PRNGKey(0)
    k_x, k_w, k_b, k_x2, k_w2 = jax.random.split(key, 5)

    # --- Test 1: small shapes from the spec; tiny channels -> VPU path, batched N ---
    N, C_in, C_out, H, W = 2, 4, 3, 16, 16
    x = jax.random.normal(k_x, (N, C_in, H, W), dtype=jnp.float32)
    weight = jax.random.normal(k_w, (C_out, C_in, 1, 1), dtype=jnp.float32) * 0.1
    bias = jax.random.normal(k_b, (C_out,), dtype=jnp.float32) * 0.1

    y = jax.block_until_ready(outconv_forward(x, weight, bias))
    assert y.shape == (N, C_out, H, W)
    assert jnp.allclose(y, _reference(x, weight, bias), atol=1e-4, rtol=1e-4)

    # --- Test 2: real OutConv channel count (C_in=64 -> MXU path), bf16 activations,
    #     spatial tiling with a ragged last tile (small target_tile_bytes forces tiling) ---
    C_in2 = 64
    x2 = jax.random.normal(k_x2, (1, C_in2, 48, 48), dtype=jnp.float32).astype(jnp.bfloat16)
    weight2 = jax.random.normal(k_w2, (C_out, C_in2, 1, 1), dtype=jnp.float32) * 0.1
    y2 = jax.block_until_ready(
        outconv_forward(x2, weight2, bias, target_tile_bytes=256 * 1024))
    assert y2.dtype == jnp.bfloat16
    assert jnp.allclose(y2.astype(jnp.float32), _reference(x2, weight2, bias),
                        atol=5e-2, rtol=5e-2)

    # --- Test 3: odd spatial size (HW not a multiple of 128), VPU path, batched N ---
    x3 = jax.random.normal(k_x, (2, C_in, 10, 10), dtype=jnp.float32)
    y3 = jax.block_until_ready(outconv_forward(x3, weight, bias))
    assert jnp.allclose(y3, _reference(x3, weight, bias), atol=1e-4, rtol=1e-4)

    print("KERNEL_OK")
</pallas_src>

<mosaic_0001>
module attributes {stable_mosaic.version = 11 : i64} {
  func.func @_outconv_kernel_vpu(%arg0: i32, %arg1: i32, %arg2: memref<3x4xf32, #tpu.memory_space<smem>>, %arg3: memref<3xf32, #tpu.memory_space<smem>>, %arg4: memref<2x4x256xf32, #tpu.memory_space<vmem>>, %arg5: memref<2x3x256xf32, #tpu.memory_space<vmem>>) attributes {dimension_semantics = [#tpu.dimension_semantics<parallel>, #tpu.dimension_semantics<parallel>], iteration_bounds = array<i64: 1, 1>, scalar_prefetch = 0 : i64, scratch_operands = 0 : i64, tpu.core_type = #tpu.core_type<tc>, window_params = [{transform_indices = @transform_0, window_bounds = array<i64: 3, 4>}, {transform_indices = @transform_1, window_bounds = array<i64: 3>}, {transform_indices = @transform_2, window_bounds = array<i64: 2, 4, 256>}, {transform_indices = @transform_3, window_bounds = array<i64: 2, 3, 256>}]} {
    %c0 = arith.constant 0 : index
    %c0_0 = arith.constant 0 : index
    %c0_1 = arith.constant 0 : index
    %0 = vector.load %arg4[%c0, %c0_0, %c0_1] : memref<2x4x256xf32, #tpu.memory_space<vmem>>, vector<1x4x256xf32>
    %1 = vector.shape_cast %0 : vector<1x4x256xf32> to vector<4x256xf32>
    %c0_2 = arith.constant 0 : index
    %2 = memref.load %arg3[%c0_2] : memref<3xf32, #tpu.memory_space<smem>>
    %3 = vector.broadcast %2 : f32 to vector<1x256xf32>
    %c0_3 = arith.constant 0 : index
    %c0_4 = arith.constant 0 : index
    %4 = memref.load %arg2[%c0_3, %c0_4] : memref<3x4xf32, #tpu.memory_space<smem>>
    %5 = vector.extract_strided_slice %1 {offsets = [0, 0], sizes = [1, 256], strides = [1, 1]} : vector<4x256xf32> to vector<1x256xf32>
    %6 = vector.broadcast %4 : f32 to vector<1x256xf32>
    %7 = arith.mulf %6, %5 : vector<1x256xf32>
    %8 = arith.addf %3, %7 : vector<1x256xf32>
    %c0_5 = arith.constant 0 : index
    %c1 = arith.constant 1 : index
    %9 = memref.load %arg2[%c0_5, %c1] : memref<3x4xf32, #tpu.memory_space<smem>>
    %10 = vector.extract_strided_slice %1 {offsets = [1, 0], sizes = [1, 256], strides = [1, 1]} : vector<4x256xf32> to vector<1x256xf32>
    %11 = vector.broadcast %9 : f32 to vector<1x256xf32>
    %12 = arith.mulf %11, %10 : vector<1x256xf32>
    %13 = arith.addf %8, %12 : vector<1x256xf32>
    %c0_6 = arith.constant 0 : index
    %c2 = arith.constant 2 : index
    %14 = memref.load %arg2[%c0_6, %c2] : memref<3x4xf32, #tpu.memory_space<smem>>
    %15 = vector.extract_strided_slice %1 {offsets = [2, 0], sizes = [1, 256], strides = [1, 1]} : vector<4x256xf32> to vector<1x256xf32>
    %16 = vector.broadcast %14 : f32 to vector<1x256xf32>
    %17 = arith.mulf %16, %15 : vector<1x256xf32>
    %18 = arith.addf %13, %17 : vector<1x256xf32>
    %c0_7 = arith.constant 0 : index
    %c3 = arith.constant 3 : index
    %19 = memref.load %arg2[%c0_7, %c3] : memref<3x4xf32, #tpu.memory_space<smem>>
    %20 = vector.extract_strided_slice %1 {offsets = [3, 0], sizes = [1, 256], strides = [1, 1]} : vector<4x256xf32> to vector<1x256xf32>
    %21 = vector.broadcast %19 : f32 to vector<1x256xf32>
    %22 = arith.mulf %21, %20 : vector<1x256xf32>
    %23 = arith.addf %18, %22 : vector<1x256xf32>
    %c1_8 = arith.constant 1 : index
    %24 = memref.load %arg3[%c1_8] : memref<3xf32, #tpu.memory_space<smem>>
    %25 = vector.broadcast %24 : f32 to vector<1x256xf32>
    %c1_9 = arith.constant 1 : index
    %c0_10 = arith.constant 0 : index
    %26 = memref.load %arg2[%c1_9, %c0_10] : memref<3x4xf32, #tpu.memory_space<smem>>
    %27 = vector.extract_strided_slice %1 {offsets = [0, 0], sizes = [1, 256], strides = [1, 1]} : vector<4x256xf32> to vector<1x256xf32>
    %28 = vector.broadcast %26 : f32 to vector<1x256xf32>
    %29 = arith.mulf %28, %27 : vector<1x256xf32>
    %30 = arith.addf %25, %29 : vector<1x256xf32>
    %c1_11 = arith.constant 1 : index
    %c1_12 = arith.constant 1 : index
    %31 = memref.load %arg2[%c1_11, %c1_12] : memref<3x4xf32, #tpu.memory_space<smem>>
    %32 = vector.extract_strided_slice %1 {offsets = [1, 0], sizes = [1, 256], strides = [1, 1]} : vector<4x256xf32> to vector<1x256xf32>
    %33 = vector.broadcast %31 : f32 to vector<1x256xf32>
    %34 = arith.mulf %33, %32 : vector<1x256xf32>
    %35 = arith.addf %30, %34 : vector<1x256xf32>
    %c1_13 = arith.constant 1 : index
    %c2_14 = arith.constant 2 : index
    %36 = memref.load %arg2[%c1_13, %c2_14] : memref<3x4xf32, #tpu.memory_space<smem>>
    %37 = vector.extract_strided_slice %1 {offsets = [2, 0], sizes = [1, 256], strides = [1, 1]} : vector<4x256xf32> to vector<1x256xf32>
    %38 = vector.broadcast %36 : f32 to vector<1x256xf32>
    %39 = arith.mulf %38, %37 : vector<1x256xf32>
    %40 = arith.addf %35, %39 : vector<1x256xf32>
    %c1_15 = arith.constant 1 : index
    %c3_16 = arith.constant 3 : index
    %41 = memref.load %arg2[%c1_15, %c3_16] : memref<3x4xf32, #tpu.memory_space<smem>>
    %42 = vector.extract_strided_slice %1 {offsets = [3, 0], sizes = [1, 256], strides = [1, 1]} : vector<4x256xf32> to vector<1x256xf32>
    %43 = vector.broadcast %41 : f32 to vector<1x256xf32>
    %44 = arith.mulf %43, %42 : vector<1x256xf32>
    %45 = arith.addf %40, %44 : vector<1x256xf32>
    %c2_17 = arith.constant 2 : index
    %46 = memref.load %arg3[%c2_17] : memref<3xf32, #tpu.memory_space<smem>>
    %47 = vector.broadcast %46 : f32 to vector<1x256xf32>
    %c2_18 = arith.constant 2 : index
    %c0_19 = arith.constant 0 : index
    %48 = memref.load %arg2[%c2_18, %c0_19] : memref<3x4xf32, #tpu.memory_space<smem>>
    %49 = vector.extract_strided_slice %1 {offsets = [0, 0], sizes = [1, 256], strides = [1, 1]} : vector<4x256xf32> to vector<1x256xf32>
    %50 = vector.broadcast %48 : f32 to vector<1x256xf32>
    %51 = arith.mulf %50, %49 : vector<1x256xf32>
    %52 = arith.addf %47, %51 : vector<1x256xf32>
    %c2_20 = arith.constant 2 : index
    %c1_21 = arith.constant 1 : index
    %53 = memref.load %arg2[%c2_20, %c1_21] : memref<3x4xf32, #tpu.memory_space<smem>>
    %54 = vector.extract_strided_slice %1 {offsets = [1, 0], sizes = [1, 256], strides = [1, 1]} : vector<4x256xf32> to vector<1x256xf32>
    %55 = vector.broadcast %53 : f32 to vector<1x256xf32>
    %56 = arith.mulf %55, %54 : vector<1x256xf32>
    %57 = arith.addf %52, %56 : vector<1x256xf32>
    %c2_22 = arith.constant 2 : index
    %c2_23 = arith.constant 2 : index
    %58 = memref.load %arg2[%c2_22, %c2_23] : memref<3x4xf32, #tpu.memory_space<smem>>
    %59 = vector.extract_strided_slice %1 {offsets = [2, 0], sizes = [1, 256], strides = [1, 1]} : vector<4x256xf32> to vector<1x256xf32>
    %60 = vector.broadcast %58 : f32 to vector<1x256xf32>
    %61 = arith.mulf %60, %59 : vector<1x256xf32>
    %62 = arith.addf %57, %61 : vector<1x256xf32>
    %c2_24 = arith.constant 2 : index
    %c3_25 = arith.constant 3 : index
    %63 = memref.load %arg2[%c2_24, %c3_25] : memref<3x4xf32, #tpu.memory_space<smem>>
    %64 = vector.extract_strided_slice %1 {offsets = [3, 0], sizes = [1, 256], strides = [1, 1]} : vector<4x256xf32> to vector<1x256xf32>
    %65 = vector.broadcast %63 : f32 to vector<1x256xf32>
    %66 = arith.mulf %65, %64 : vector<1x256xf32>
    %67 = arith.addf %62, %66 : vector<1x256xf32>
    %68 = tpu.concatenate %23, %45, %67 in 0 : vector<1x256xf32>, vector<1x256xf32>, vector<1x256xf32> -> vector<3x256xf32>
    %c0_26 = arith.constant 0 : index
    %c0_27 = arith.constant 0 : index
    %c0_28 = arith.constant 0 : index
    %69 = vector.load %arg5[%c0_26, %c0_27, %c0_28] : memref<2x3x256xf32, #tpu.memory_space<vmem>>, vector<1x3x256xf32>
    %70 = vector.shape_cast %69 : vector<1x3x256xf32> to vector<3x256xf32>
    %71 = vector.shape_cast %68 : vector<3x256xf32> to vector<1x3x256xf32>
    tpu.vector_store %arg5[%c0_26, %c0_27, %c0_28], %71 {strides = array<i32>} : memref<2x3x256xf32, #tpu.memory_space<vmem>>, vector<1x3x256xf32>,
    %c1_29 = arith.constant 1 : index
    %c0_30 = arith.constant 0 : index
    %c0_31 = arith.constant 0 : index
    %72 = vector.load %arg4[%c1_29, %c0_30, %c0_31] : memref<2x4x256xf32, #tpu.memory_space<vmem>>, vector<1x4x256xf32>
    %73 = vector.shape_cast %72 : vector<1x4x256xf32> to vector<4x256xf32>
    %c0_32 = arith.constant 0 : index
    %74 = memref.load %arg3[%c0_32] : memref<3xf32, #tpu.memory_space<smem>>
    %75 = vector.broadcast %74 : f32 to vector<1x256xf32>
    %c0_33 = arith.constant 0 : index
    %c0_34 = arith.constant 0 : index
    %76 = memref.load %arg2[%c0_33, %c0_34] : memref<3x4xf32, #tpu.memory_space<smem>>
    %77 = vector.extract_strided_slice %73 {offsets = [0, 0], sizes = [1, 256], strides = [1, 1]} : vector<4x256xf32> to vector<1x256xf32>
    %78 = vector.broadcast %76 : f32 to vector<1x256xf32>
    %79 = arith.mulf %78, %77 : vector<1x256xf32>
    %80 = arith.addf %75, %79 : vector<1x256xf32>
    %c0_35 = arith.constant 0 : index
    %c1_36 = arith.constant 1 : index
    %81 = memref.load %arg2[%c0_35, %c1_36] : memref<3x4xf32, #tpu.memory_space<smem>>
    %82 = vector.extract_strided_slice %73 {offsets = [1, 0], sizes = [1, 256], strides = [1, 1]} : vector<4x256xf32> to vector<1x256xf32>
    %83 = vector.broadcast %81 : f32 to vector<1x256xf32>
    %84 = arith.mulf %83, %82 : vector<1x256xf32>
    %85 = arith.addf %80, %84 : vector<1x256xf32>
    %c0_37 = arith.constant 0 : index
    %c2_38 = arith.constant 2 : index
    %86 = memref.load %arg2[%c0_37, %c2_38] : memref<3x4xf32, #tpu.memory_space<smem>>
    %87 = vector.extract_strided_slice %73 {offsets = [2, 0], sizes = [1, 256], strides = [1, 1]} : vector<4x256xf32> to vector<1x256xf32>
    %88 = vector.broadcast %86 : f32 to vector<1x256xf32>
    %89 = arith.mulf %88, %87 : vector<1x256xf32>
    %90 = arith.addf %85, %89 : vector<1x256xf32>
    %c0_39 = arith.constant 0 : index
    %c3_40 = arith.constant 3 : index
    %91 = memref.load %arg2[%c0_39, %c3_40] : memref<3x4xf32, #tpu.memory_space<smem>>
    %92 = vector.extract_strided_slice %73 {offsets = [3, 0], sizes = [1, 256], strides = [1, 1]} : vector<4x256xf32> to vector<1x256xf32>
    %93 = vector.broadcast %91 : f32 to vector<1x256xf32>
    %94 = arith.mulf %93, %92 : vector<1x256xf32>
    %95 = arith.addf %90, %94 : vector<1x256xf32>
    %c1_41 = arith.constant 1 : index
    %96 = memref.load %arg3[%c1_41] : memref<3xf32, #tpu.memory_space<smem>>
    %97 = vector.broadcast %96 : f32 to vector<1x256xf32>
    %c1_42 = arith.constant 1 : index
    %c0_43 = arith.constant 0 : index
    %98 = memref.load %arg2[%c1_42, %c0_43] : memref<3x4xf32, #tpu.memory_space<smem>>
    %99 = vector.extract_strided_slice %73 {offsets = [0, 0], sizes = [1, 256], strides = [1, 1]} : vector<4x256xf32> to vector<1x256xf32>
    %100 = vector.broadcast %98 : f32 to vector<1x256xf32>
    %101 = arith.mulf %100, %99 : vector<1x256xf32>
    %102 = arith.addf %97, %101 : vector<1x256xf32>
    %c1_44 = arith.constant 1 : index
    %c1_45 = arith.constant 1 : index
    %103 = memref.load %arg2[%c1_44, %c1_45] : memref<3x4xf32, #tpu.memory_space<smem>>
    %104 = vector.extract_strided_slice %73 {offsets = [1, 0], sizes = [1, 256], strides = [1, 1]} : vector<4x256xf32> to vector<1x256xf32>
    %105 = vector.broadcast %103 : f32 to vector<1x256xf32>
    %106 = arith.mulf %105, %104 : vector<1x256xf32>
    %107 = arith.addf %102, %106 : vector<1x256xf32>
    %c1_46 = arith.constant 1 : index
    %c2_47 = arith.constant 2 : index
    %108 = memref.load %arg2[%c1_46, %c2_47] : memref<3x4xf32, #tpu.memory_space<smem>>
    %109 = vector.extract_strided_slice %73 {offsets = [2, 0], sizes = [1, 256], strides = [1, 1]} : vector<4x256xf32> to vector<1x256xf32>
    %110 = vector.broadcast %108 : f32 to vector<1x256xf32>
    %111 = arith.mulf %110, %109 : vector<1x256xf32>
    %112 = arith.addf %107, %111 : vector<1x256xf32>
    %c1_48 = arith.constant 1 : index
    %c3_49 = arith.constant 3 : index
    %113 = memref.load %arg2[%c1_48, %c3_49] : memref<3x4xf32, #tpu.memory_space<smem>>
    %114 = vector.extract_strided_slice %73 {offsets = [3, 0], sizes = [1, 256], strides = [1, 1]} : vector<4x256xf32> to vector<1x256xf32>
    %115 = vector.broadcast %113 : f32 to vector<1x256xf32>
    %116 = arith.mulf %115, %114 : vector<1x256xf32>
    %117 = arith.addf %112, %116 : vector<1x256xf32>
    %c2_50 = arith.constant 2 : index
    %118 = memref.load %arg3[%c2_50] : memref<3xf32, #tpu.memory_space<smem>>
    %119 = vector.broadcast %118 : f32 to vector<1x256xf32>
    %c2_51 = arith.constant 2 : index
    %c0_52 = arith.constant 0 : index
    %120 = memref.load %arg2[%c2_51, %c0_52] : memref<3x4xf32, #tpu.memory_space<smem>>
    %121 = vector.extract_strided_slice %73 {offsets = [0, 0], sizes = [1, 256], strides = [1, 1]} : vector<4x256xf32> to vector<1x256xf32>
    %122 = vector.broadcast %120 : f32 to vector<1x256xf32>
    %123 = arith.mulf %122, %121 : vector<1x256xf32>
    %124 = arith.addf %119, %123 : vector<1x256xf32>
    %c2_53 = arith.constant 2 : index
    %c1_54 = arith.constant 1 : index
    %125 = memref.load %arg2[%c2_53, %c1_54] : memref<3x4xf32, #tpu.memory_space<smem>>
    %126 = vector.extract_strided_slice %73 {offsets = [1, 0], sizes = [1, 256], strides = [1, 1]} : vector<4x256xf32> to vector<1x256xf32>
    %127 = vector.broadcast %125 : f32 to vector<1x256xf32>
    %128 = arith.mulf %127, %126 : vector<1x256xf32>
    %129 = arith.addf %124, %128 : vector<1x256xf32>
    %c2_55 = arith.constant 2 : index
    %c2_56 = arith.constant 2 : index
    %130 = memref.load %arg2[%c2_55, %c2_56] : memref<3x4xf32, #tpu.memory_space<smem>>
    %131 = vector.extract_strided_slice %73 {offsets = [2, 0], sizes = [1, 256], strides = [1, 1]} : vector<4x256xf32> to vector<1x256xf32>
    %132 = vector.broadcast %130 : f32 to vector<1x256xf32>
    %133 = arith.mulf %132, %131 : vector<1x256xf32>
    %134 = arith.addf %129, %133 : vector<1x256xf32>
    %c2_57 = arith.constant 2 : index
    %c3_58 = arith.constant 3 : index
    %135 = memref.load %arg2[%c2_57, %c3_58] : memref<3x4xf32, #tpu.memory_space<smem>>
    %136 = vector.extract_strided_slice %73 {offsets = [3, 0], sizes = [1, 256], strides = [1, 1]} : vector<4x256xf32> to vector<1x256xf32>
    %137 = vector.broadcast %135 : f32 to vector<1x256xf32>
    %138 = arith.mulf %137, %136 : vector<1x256xf32>
    %139 = arith.addf %134, %138 : vector<1x256xf32>
    %140 = tpu.concatenate %95, %117, %139 in 0 : vector<1x256xf32>, vector<1x256xf32>, vector<1x256xf32> -> vector<3x256xf32>
    %c1_59 = arith.constant 1 : index
    %c0_60 = arith.constant 0 : index
    %c0_61 = arith.constant 0 : index
    %141 = vector.load %arg5[%c1_59, %c0_60, %c0_61] : memref<2x3x256xf32, #tpu.memory_space<vmem>>, vector<1x3x256xf32>
    %142 = vector.shape_cast %141 : vector<1x3x256xf32> to vector<3x256xf32>
    %143 = vector.shape_cast %140 : vector<3x256xf32> to vector<1x3x256xf32>
    tpu.vector_store %arg5[%c1_59, %c0_60, %c0_61], %143 {strides = array<i32>} : memref<2x3x256xf32, #tpu.memory_space<vmem>>, vector<1x3x256xf32>,
    return
  }
  func.func @transform_0(%arg0: i32, %arg1: i32) -> (i32, i32) {
    %c0_i32 = arith.constant 0 : i32
    %c0_i32_0 = arith.constant 0 : i32
    %c0_i32_1 = arith.constant 0 : i32
    return %c0_i32, %c0_i32_0 : i32, i32
  }
  func.func @transform_1(%arg0: i32, %arg1: i32) -> i32 {
    %c0_i32 = arith.constant 0 : i32
    %c0_i32_0 = arith.constant 0 : i32
    return %c0_i32 : i32
  }
  func.func @transform_2(%arg0: i32, %arg1: i32) -> (i32, i32, i32) {
    %c0_i32 = arith.constant 0 : i32
    %c0_i32_0 = arith.constant 0 : i32
    return %arg1, %c0_i32, %arg0 : i32, i32, i32
  }
  func.func @transform_3(%arg0: i32, %arg1: i32) -> (i32, i32, i32) {
    %c0_i32 = arith.constant 0 : i32
    %c0_i32_0 = arith.constant 0 : i32
    return %arg1, %c0_i32, %arg0 : i32, i32, i32
  }
}

</mosaic_0001>

<bundles_post_ra>
// kernel: outconv_forward.1
= control target key start
LH: loop header
LB: loop body
LE: loop exit
PB: predicated region body
PF: predicated region fallthrough
CT: control target
= control target key end

     0   :  { %8 = vsyncpa [#allocation3], 0  ;;  %s511_s0 = inlined_call_operand.vmem [shape: f32[3,4], index: 0, kind: input, shape index: {}]   ;;  %s512_s1 = inlined_call_operand.vmem [shape: f32[3], index: 1, kind: input, shape index: {}]   ;;  %s513_s2 = inlined_call_operand.vmem [shape: f32[2,4,256], index: 2, kind: input, shape index: {}]   ;;  %s514_s3 = inlined_call_operand.vmem [shape: f32[2,3,256], index: 3, kind: output, shape index: {}]  }
   0x1   :  { %s16_s14 = sshll.u32 %s511_s0, 4  ;;  %s17_s14 = int_to_ptr.vmem [resolvable:$true] %s16_s14 }
   0x2   :  { %9 = vsyncpa [#allocation5], 0  ;;  %s26_s17 = sshll.u32 %s512_s1, 4  ;;  %s363_s18 = scalar_lea.vmem %s17_s14, 64  ;;  %s27_s17 = int_to_ptr.vmem [resolvable:$true] %s26_s17 }
   0x3   :  { %p364_p0 = scmp.ne.s32.totalorder %s17_s14, %s363_s18  ;;  %p368_p1 = scmp.lt.s32.totalorder %s17_s14, %s17_s14 }
   0x4   :  { %p369_p2 = scmp.lt.s32.totalorder %s363_s18, %s363_s18 }
   0x6   :  { %p370_p3 = por %p369_p2, %p368_p1 }
   0x8   :  { %p371_p4 = pnand %p370_p3, %p364_p0 }
   0xa   :  { %374 = shalt.err (!%p371_p4)
}
   0xb   :  { %s391_s19 = smov [#allocation2]   ;;  %s375_s20 = scalar_lea.vmem %s27_s17, 16 }
   0xc   :  { %19 = dma.vmem_to_smem %s17_s14, 64, %s391_s19, [#allocation3]  }
   0xd   :  { %p376_p5 = scmp.ne.s32.totalorder %s27_s17, %s375_s20  ;;  %p380_p6 = scmp.lt.s32.totalorder %s27_s17, %s27_s17 }
   0xe   :  { %p381_p7 = scmp.lt.s32.totalorder %s375_s20, %s375_s20 }
  0x10   :  { %p382_p8 = por %p381_p7, %p380_p6 }
  0x12   :  { %p383_p9 = pnand %p382_p8, %p376_p5 }
  0x14   :  { %386 = shalt.err (!%p383_p9)
}
  0x15   :  { %s392_s0 = smov [#allocation4]  }
  0x16   :  { %29 = dma.vmem_to_smem %s27_s17, 16, %s392_s0, [#allocation5]  }
  0x17   :  { %387 = dma.done.wait [#allocation3], 64  }
  0x18   :  { %388 = vsyncadd [#allocation3], 4294967232 }
  0x19   :  { %389 = dma.done.wait [#allocation5], 16  }
  0x1a   :  { %390 = vsyncadd [#allocation5], 4294967280 }
  0x1b   :  { %38 = sfence }
  0x1c   :  { %s419_s1 = sld [smem:[#allocation4]]  ;;  %v131_v0 = vlaneseq  ;;  %s421_s22 = sld [smem:[#allocation2 + $0x1]]  ;;  %v39_v2 = vld [vmem:[%s513_s2] sm:$0xff]  ;;  %v443_v3 = vld [vmem:[%s513_s2 + $0x8] sm:$0xff]  ;;  %vm163_vm0 = vcmask 1040384   ;;  %vm166_vm1 = vcmask 1041408  }
  0x1d   :  { %s42_s21 = sld [smem:[#allocation2]]  ;;  %s423_s23 = sld [smem:[#allocation2 + $0x2]] }
  0x1e   :  { %s425_s24 = sld [smem:[#allocation2 + $0x3]]  ;;  %s427_s25 = sld [smem:[#allocation4 + $0x1]]  ;;  %v132_v1 = vshrl.u32 %v131_v0, 7 }
  0x1f   :  { %s429_s26 = sld [smem:[#allocation2 + $0x80]]  ;;  %s431_s27 = sld [smem:[#allocation2 + $0x81]] }
  0x20   :  { %s436_s30 = sld [smem:[#allocation2 + $0x82]]  ;;  %s438_s4 = sld [smem:[#allocation2 + $0x83]]  ;;  %v454_v6 = vsub.s32 0, %v132_v1  ;;  %v456_v7 = vsub.s32 4, %v132_v1 }
  0x21   :  { %s445_s7 = sld [smem:[#allocation4 + $0x2]]  ;;  %s447_s8 = sld [smem:[#allocation2 + $0x100]] }
  0x22   :  { %v41_v4 = vstv %s419_s1  ;;  %s450_s9 = sld [smem:[#allocation2 + $0x101]]  ;;  %s452_s10 = sld [smem:[#allocation2 + $0x102]]  ;;  %v47_v9 = vstv %s421_s22 }
  0x23   :  { %v43_v5 = vstv %s42_s21  ;;  %v55_v10 = vstv %s423_s23  ;;  %s460_s2 = sld [smem:[#allocation2 + $0x103]]  ;;  %v48_v12 = vmul.f32 %v47_v9, %v39_v2  ;;  %v184_v51 = vmul.f32 %v443_v3, %v47_v9 }
  0x24   :  { %v44_v8 = vmul.f32 %v43_v5, %v39_v2  ;;  %v180_v11 = vmul.f32 %v443_v3, %v43_v5  ;;  %v56_v13 = vmul.f32 %v55_v10, %v39_v2  ;;  %v63_v14 = vstv %s425_s24 }
  0x25   :  { %v71_v15 = vstv %s427_s25  ;;  %v64_v17 = vmul.f32 %v63_v14, %v39_v2  ;;  %v73_v18 = vstv %s429_s26  ;;  %v77_v19 = vstv %s431_s27 }
  0x26   :  { %v45_v16 = vadd.f32 %v44_v8, %v41_v4  ;;  %v316_v20 = vrot.slane %v48_v12, 9  ;;  %v318_v21 = vrot.slane %v56_v13, 10  ;;  %v74_v22 = vmul.f32 %v73_v18, %v39_v2 }
  0x27   :  { %v78_v23 = vmul.f32 %v77_v19, %v39_v2  ;;  %v320_v24 = vrot.slane %v64_v17, 11  ;;  %v85_v25 = vstv %s436_s30  ;;  %v93_v26 = vstv %s438_s4 }
  0x28   :  { %v101_v27 = vstv %s445_s7  ;;  %v53_v28 = vadd.f32 %v316_v20, %v45_v16  ;;  %v75_v29 = vadd.f32 %v74_v22, %v71_v15  ;;  %v86_v31 = vmul.f32 %v85_v25, %v39_v2 }
  0x29   :  { %v324_v30 = vrot.slane %v78_v23, 9  ;;  %v94_v32 = vmul.f32 %v93_v26, %v39_v2  ;;  %v103_v33 = vstv %s447_s8  ;;  %v107_v34 = vstv %s450_s9 }
  0x2a   :  { %v115_v35 = vstv %s452_s10  ;;  %v61_v36 = vadd.f32 %v318_v21, %v53_v28  ;;  %v326_v38 = vrot.slane %v86_v31, 10  ;;  %v104_v39 = vmul.f32 %v103_v33, %v39_v2 }
  0x2b   :  { %v83_v37 = vadd.f32 %v324_v30, %v75_v29  ;;  %v328_v40 = vrot.slane %v94_v32, 11  ;;  %v108_v41 = vmul.f32 %v107_v34, %v39_v2  ;;  %v116_v42 = vmul.f32 %v115_v35, %v39_v2 }
  0x2c   :  { %v123_v43 = vstv %s460_s2  ;;  %v69_v44 = vadd.f32 %v320_v24, %v61_v36  ;;  %v105_v46 = vadd.f32 %v104_v39, %v101_v27  ;;  %v181_v50 = vadd.f32 %v180_v11, %v41_v4 }
  0x2d   :  { %v91_v45 = vadd.f32 %v326_v38, %v83_v37  ;;  %v124_v47 = vmul.f32 %v123_v43, %v39_v2  ;;  %v332_v48 = vrot.slane %v108_v41, 9  ;;  %v334_v49 = vrot.slane %v116_v42, 10 }
  0x2e   :  { %v134_v54 = vrot.slane %v69_v44, %v454_v6  ;;  %v138_v55 = vrot.slane %v69_v44, %v456_v7  ;;  %v339_v57 = vrot.slane %v184_v51, 9  ;;  %v192_v58 = vmul.f32 %v443_v3, %v55_v10 }
  0x2f   :  { %v99_v52 = vadd.f32 %v328_v40, %v91_v45  ;;  %v336_v53 = vrot.slane %v124_v47, 11  ;;  %v113_v56 = vadd.f32 %v332_v48, %v105_v46  ;;  %v200_v59 = vmul.f32 %v443_v3, %v63_v14 }
  0x30   :  { %v210_v62 = vmul.f32 %v443_v3, %v73_v18  ;;  %v214_v63 = vmul.f32 %v443_v3, %v77_v19  ;;  %v189_v1 = vadd.f32 %v339_v57, %v181_v50  ;;  %v341_v2 = vrot.slane %v192_v58, 10 }
  0x31   :  { %v145_v60 = vrot.slane %v99_v52, %v454_v6  ;;  %v149_v61 = vrot.slane %v99_v52, %v456_v7  ;;  %v121_v0 = vadd.f32 %v334_v49, %v113_v56  ;;  %v343_v4 = vrot.slane %v200_v59, 11 }
  0x32   :  { %v211_v9 = vadd.f32 %v210_v62, %v71_v15  ;;  %v347_v10 = vrot.slane %v214_v63, 9  ;;  %v197_v12 = vadd.f32 %v341_v2, %v189_v1  ;;  %v222_v13 = vmul.f32 %v443_v3, %v85_v25 }
  0x33   :  { %v164_v5 = vsel %vm163_vm0, %v134_v54, %v145_v60  ;;  %v165_v8 = vsel %vm163_vm0, %v138_v55, %v149_v61  ;;  %v129_v11 = vadd.f32 %v336_v53, %v121_v0  ;;  %v230_v14 = vmul.f32 %v443_v3, %v93_v26 }
  0x34   :  { %v219_v16 = vadd.f32 %v347_v10, %v211_v9  ;;  %v240_v17 = vmul.f32 %v443_v3, %v103_v33  ;;  %v244_v18 = vmul.f32 %v443_v3, %v107_v34  ;;  %v252_v19 = vmul.f32 %v443_v3, %v115_v35 }
  0x35   :  { %v156_v20 = vrot.slane %v129_v11, %v454_v6  ;;  %v160_v21 = vrot.slane %v129_v11, %v456_v7  ;;  %v205_v22 = vadd.f32 %v343_v4, %v197_v12  ;;  %v349_v15 = vrot.slane %v222_v13, 10 }
  0x36   :  { %v351_v23 = vrot.slane %v230_v14, 11  ;;  %v241_v24 = vadd.f32 %v240_v17, %v101_v27  ;;  %v355_v28 = vrot.slane %v244_v18, 9  ;;  %v357_v29 = vrot.slane %v252_v19, 10 }
  0x37   :  { %v167_v25 = vsel %vm166_vm1, %v164_v5, %v156_v20  ;;  %v168_v26 = vsel %vm166_vm1, %v165_v8, %v160_v21  ;;  %v227_v30 = vadd.f32 %v349_v15, %v219_v16  ;;  %v260_v31 = vmul.f32 %v443_v3, %v123_v43 }
  0x38   :  { %v171_v32 = vcombine.low %v167_v25, %v168_v26  ;;  %v249_v33 = vadd.f32 %v355_v28, %v241_v24  ;;  %v270_v36 = vrot.slane %v205_v22, %v454_v6  ;;  %v274_v37 = vrot.slane %v205_v22, %v456_v7 }
  0x39   :  { %v235_v34 = vadd.f32 %v351_v23, %v227_v30  ;;  %v359_v35 = vrot.slane %v260_v31, 11 }
  0x3a   :  { %173 = vst [vmem:[%s514_s3] sm:$0x77] %v171_v32  ;;  %v257_v27 = vadd.f32 %v357_v29, %v249_v33 }
  0x3b   :  { %v281_v38 = vrot.slane %v235_v34, %v454_v6  ;;  %v285_v39 = vrot.slane %v235_v34, %v456_v7 }
  0x3c   :  { %v265_v40 = vadd.f32 %v359_v35, %v257_v27 }
  0x3d   :  { %v299_v3 = vsel %vm163_vm0, %v270_v36, %v281_v38  ;;  %v300_v41 = vsel %vm163_vm0, %v274_v37, %v285_v39 }
  0x3e   :  { %v292_v42 = vrot.slane %v265_v40, %v454_v6  ;;  %v296_v43 = vrot.slane %v265_v40, %v456_v7 }
  0x40   :  { %v301_v44 = vsel %vm166_vm1, %v299_v3, %v292_v42  ;;  %v302_v45 = vsel %vm166_vm1, %v300_v41, %v296_v43 }
  0x41   :  { %v305_v46 = vcombine.low %v301_v44, %v302_v45 }
  0x43   :  { %360 = vst [vmem:[%s514_s3 + $0x8] sm:$0x77] %v305_v46 }
  0x44   :  { %313 = vsyncpa [#allocation3], 1 }
  0x45   :  { %314 = vsyncpa [#allocation5], 1 }

</bundles_post_ra>
